<compile_context>
chip_gen: v5e
topology: v5e:2x2
jax: 0.10.0
libtpu: 0.0.40
codegen_flags: <defaults>
</compile_context>

<pallas_src>
import functools

import jax
import jax.numpy as jnp
from jax.experimental import pallas as pl
from jax.experimental.pallas import tpu as pltpu


def _pretrain_embedding_kernel(ids_ref, tab_ref, out_ref):
    # ids_ref: (1, 1, 2*T) int32  -- [exercise ids | skill ids + num_exercises]
    # tab_ref: (ES_pad, D) bf16   -- [exercise_embed ; skill_embed] (row-concat)
    # out_ref: (1, 1, T)  f32
    ids = ids_ref[0]                                    # (1, 2*T)
    es_pad = tab_ref.shape[0]
    two_t = ids.shape[1]
    t = two_t // 2

    # Transposed one-hot: ohT[c, r] = (c == ids[r]).  bf16 is exact for 0/1.
    row_iota = jax.lax.broadcasted_iota(jnp.int32, (es_pad, two_t), 0)
    oh_t = (row_iota == ids).astype(jnp.bfloat16)       # (ES_pad, 2*T)

    # Single fused MXU gather for both tables:
    #   embT[d, r] = sum_c tab[c, d] * ohT[c, r]   -> (D, 2*T), f32 accumulate.
    emb_t = jax.lax.dot_general(
        tab_ref[...], oh_t,
        dimension_numbers=(((0,), (0,)), ((), ())),
        preferred_element_type=jnp.float32)

    ex_t = emb_t[:, :t]                                 # (D, T) exercise emb (transposed)
    sk_t = emb_t[:, t:]                                 # (D, T) skill emb (transposed)

    # Row-wise dot product as a sublane reduction -> lane-dense (1, T) row.
    sim = jnp.sum(ex_t * sk_t, axis=0, keepdims=True)   # (1, T)
    out_ref[0] = jax.nn.sigmoid(sim)


@functools.partial(jax.jit, static_argnames=("tile_n",))
def pretrain_embedding_forward(pairs, exercise_embed, skill_embed, *, tile_n=256):
    """JAX/Pallas equivalent of PretrainEmbedding.forward -> (N,) f32 sigmoid sims."""
    num_exercises, embed_dim = exercise_embed.shape
    num_skills, _ = skill_embed.shape

    pairs = jnp.asarray(pairs).astype(jnp.int32)
    n = pairs.shape[0]

    # Clamp (as in the PyTorch module) and offset skill ids into the
    # row-concatenated table [exercise_embed ; skill_embed].
    ex_ids = jnp.clip(pairs[:, 0], 0, num_exercises - 1)
    sk_ids = jnp.clip(pairs[:, 1], 0, num_skills - 1) + num_exercises

    num_tiles = pl.cdiv(n, tile_n)
    n_pad = num_tiles * tile_n
    ex_ids = jnp.pad(ex_ids, (0, n_pad - n))                               # row 0 (valid)
    sk_ids = jnp.pad(sk_ids, (0, n_pad - n), constant_values=num_exercises)

    # Lane-dense packed ids: one (1, 2*tile_n) int32 row per tile, single DMA.
    ids = jnp.concatenate(
        [ex_ids.reshape(num_tiles, 1, tile_n),
         sk_ids.reshape(num_tiles, 1, tile_n)], axis=2)                    # (G, 1, 2*T)

    # bf16 concatenated table, rows padded to a sublane multiple (padded rows
    # are never selected by any clamped id, so they contribute zero).
    tab = jnp.concatenate([exercise_embed, skill_embed], axis=0).astype(jnp.bfloat16)
    es = num_exercises + num_skills
    es_pad = ((es + 7) // 8) * 8
    if es_pad != es:
        tab = jnp.pad(tab, ((0, es_pad - es), (0, 0)))

    # TODO(synk): for large tables (E+S beyond a few thousand rows) switch to a
    # scalar-prefetch + DMA row-gather path instead of the one-hot MXU gather.
    out = pl.pallas_call(
        _pretrain_embedding_kernel,
        out_shape=jax.ShapeDtypeStruct((num_tiles, 1, tile_n), jnp.float32),
        grid=(num_tiles,),
        in_specs=[
            pl.BlockSpec((1, 1, 2 * tile_n), lambda i: (i, 0, 0)),  # ids: pipelined per tile
            pl.BlockSpec((es_pad, embed_dim), lambda i: (0, 0)),    # table: VMEM-resident
        ],
        out_specs=pl.BlockSpec((1, 1, tile_n), lambda i: (i, 0, 0)),
        compiler_params=pltpu.CompilerParams(
            dimension_semantics=("parallel",),          # v7x: shard tiles over 2 TCs
            vmem_limit_bytes=64 * 1024 * 1024),
    )(ids, tab)

    return out.reshape(n_pad)[:n]


def _xavier_uniform(key, shape):
    # nn.Embedding weight shape: (num_embeddings, dim)
    fan_in, fan_out = shape[1], shape[0]
    limit = jnp.sqrt(6.0 / (fan_in + fan_out))
    return jax.random.uniform(key, shape, jnp.float32, -limit, limit)


if __name__ == "__main__":
    # Small synthetic configuration (2 tiles of 256 -> exercises the pipeline).
    num_exercises = 16
    num_skills = 8
    embed_dim = 32
    num_pairs = 300

    key = jax.random.PRNGKey(0)
    k_ex, k_sk, k_p0, k_p1 = jax.random.split(key, 4)

    # Deterministic xavier-uniform embedding tables (as in the module __init__).
    exercise_embed = _xavier_uniform(k_ex, (num_exercises, embed_dim))
    skill_embed = _xavier_uniform(k_sk, (num_skills, embed_dim))

    # Synthetic exercise/skill training pairs (generate_pairs analogue), with a
    # few deliberately out-of-range ids to exercise the clamp path.
    ex_ids = jax.random.randint(k_p0, (num_pairs,), 0, num_exercises + 2)
    sk_ids = jax.random.randint(k_p1, (num_pairs,), 0, num_skills + 2)
    pairs = jnp.stack([ex_ids, sk_ids], axis=1)  # (N, 2)

    out = pretrain_embedding_forward(pairs, exercise_embed, skill_embed)
    out = jax.block_until_ready(out)

    # Pure-JAX f32 reference of the same forward semantics.
    ref_e = exercise_embed[jnp.clip(pairs[:, 0], 0, num_exercises - 1)]
    ref_s = skill_embed[jnp.clip(pairs[:, 1], 0, num_skills - 1)]
    ref = jax.nn.sigmoid(jnp.sum(ref_e * ref_s, axis=1))

    assert out.shape == (num_pairs,)
    # bf16 table rounding inside the kernel -> ~1e-3-level deviation vs f32 ref.
    assert jnp.allclose(out, ref, atol=5e-3, rtol=0.0), float(jnp.max(jnp.abs(out - ref)))

    # TODO(synk): graph construction, meta-path random walks, generate_pairs and
    # train_step are host-side (networkx / optimizer) logic; only forward() is kernelized.
    print("KERNEL_OK")
</pallas_src>

<mosaic_0001>
module attributes {stable_mosaic.version = 11 : i64} {
  func.func @_pretrain_embedding_kernel(%arg0: i32, %arg1: memref<1x1x512xi32, #tpu.memory_space<vmem>>, %arg2: memref<24x32xbf16, #tpu.memory_space<vmem>>, %arg3: memref<1x1x256xf32, #tpu.memory_space<vmem>>) attributes {dimension_semantics = [#tpu.dimension_semantics<parallel>], iteration_bounds = array<i64: 2>, scalar_prefetch = 0 : i64, scratch_operands = 0 : i64, tpu.core_type = #tpu.core_type<tc>, window_params = [{transform_indices = @transform_0, window_bounds = array<i64: 1, 1, 512>}, {pipeline_mode = #tpu.pipeline_mode<synchronous>, transform_indices = @transform_1, window_bounds = array<i64: 24, 32>}, {transform_indices = @transform_2, window_bounds = array<i64: 1, 1, 256>}]} {
    %c0 = arith.constant 0 : index
    %c0_0 = arith.constant 0 : index
    %c0_1 = arith.constant 0 : index
    %0 = vector.load %arg1[%c0, %c0_0, %c0_1] : memref<1x1x512xi32, #tpu.memory_space<vmem>>, vector<1x1x512xi32>
    %1 = vector.shape_cast %0 : vector<1x1x512xi32> to vector<1x512xi32>
    %2 = tpu.iota {dimensions = array<i32: 0>} : vector<24x512xi32>
    %3 = vector.broadcast %1 : vector<1x512xi32> to vector<24x512xi32>
    %4 = arith.cmpi eq, %2, %3 : vector<24x512xi32>
    %5 = arith.extui %4 : vector<24x512xi1> to vector<24x512xi32>
    %6 = arith.sitofp %5 : vector<24x512xi32> to vector<24x512xf32>
    %7 = arith.truncf %6 : vector<24x512xf32> to vector<24x512xbf16>
    %c0_2 = arith.constant 0 : index
    %c0_3 = arith.constant 0 : index
    %8 = vector.load %arg2[%c0_2, %c0_3] : memref<24x32xbf16, #tpu.memory_space<vmem>>, vector<24x32xbf16>
    %cst = arith.constant dense<0.000000e+00> : vector<32x512xf32>
    %9 = tpu.matmul %8, %7, %cst {dimension_numbers = #tpu.dot_dimension_numbers<[0], [0], [1], [1], [0, 1, 1, 1], [], []>} : vector<24x32xbf16>, vector<24x512xbf16>, vector<32x512xf32> -> vector<32x512xf32>
    %10 = vector.extract_strided_slice %9 {offsets = [0, 0], sizes = [32, 256], strides = [1, 1]} : vector<32x512xf32> to vector<32x256xf32>
    %11 = vector.extract_strided_slice %9 {offsets = [0, 256], sizes = [32, 256], strides = [1, 1]} : vector<32x512xf32> to vector<32x256xf32>
    %12 = arith.mulf %10, %11 : vector<32x256xf32>
    %cst_4 = arith.constant dense<0.000000e+00> : vector<256xf32>
    %13 = vector.multi_reduction <add>, %12, %cst_4 [0] : vector<32x256xf32> to vector<256xf32>
    %14 = vector.shape_cast %13 : vector<256xf32> to vector<1x256xf32>
    %15 = arith.negf %14 : vector<1x256xf32>
    %16 = math.exp %15 : vector<1x256xf32>
    %cst_5 = arith.constant 1.000000e+00 : f32
    %17 = vector.broadcast %cst_5 : f32 to vector<1x256xf32>
    %18 = arith.addf %17, %16 : vector<1x256xf32>
    %19 = arith.divf %17, %18 : vector<1x256xf32>
    %c0_6 = arith.constant 0 : index
    %c0_7 = arith.constant 0 : index
    %c0_8 = arith.constant 0 : index
    %20 = vector.load %arg3[%c0_6, %c0_7, %c0_8] : memref<1x1x256xf32, #tpu.memory_space<vmem>>, vector<1x1x256xf32>
    %21 = vector.shape_cast %20 : vector<1x1x256xf32> to vector<1x256xf32>
    %22 = vector.shape_cast %19 : vector<1x256xf32> to vector<1x1x256xf32>
    tpu.vector_store %arg3[%c0_6, %c0_7, %c0_8], %22 {strides = array<i32>} : memref<1x1x256xf32, #tpu.memory_space<vmem>>, vector<1x1x256xf32>,
    return
  }
  func.func @transform_0(%arg0: i32) -> (i32, i32, i32) {
    %c0_i32 = arith.constant 0 : i32
    %c0_i32_0 = arith.constant 0 : i32
    %c0_i32_1 = arith.constant 0 : i32
    return %arg0, %c0_i32, %c0_i32_0 : i32, i32, i32
  }
  func.func @transform_1(%arg0: i32) -> (i32, i32) {
    %c0_i32 = arith.constant 0 : i32
    %c0_i32_0 = arith.constant 0 : i32
    %c0_i32_1 = arith.constant 0 : i32
    return %c0_i32, %c0_i32_0 : i32, i32
  }
  func.func @transform_2(%arg0: i32) -> (i32, i32, i32) {
    %c0_i32 = arith.constant 0 : i32
    %c0_i32_0 = arith.constant 0 : i32
    %c0_i32_1 = arith.constant 0 : i32
    return %arg0, %c0_i32, %c0_i32_0 : i32, i32, i32
  }
}

</mosaic_0001>

<bundles_post_ra>
// kernel: pretrain_embedding_forward.1
= control target key start
LH: loop header
LB: loop body
LE: loop exit
PB: predicated region body
PF: predicated region fallthrough
CT: control target
= control target key end

     0   :  { %7 = vsyncpa [#allocation3], 0  ;;  %s754_s0 = inlined_call_operand.vmem [shape: s32[2,1,512], index: 0, kind: input, shape index: {}]   ;;  %s755_s1 = inlined_call_operand.vmem [shape: bf16[24,32], index: 1, kind: input, shape index: {}]   ;;  %s756_s2 = inlined_call_operand.hbm [shape: f32[2,1,256], index: 2, kind: output, shape index: {}]  }
   0x1   :  { %9 = vsyncpa [#allocation3 + $0x1], 0  ;;  %s644_s9 = smov 0   ;;  %s646_s10 = smov 0  }
   0x2   :  { %s648_s11 = smov 0   ;;  %s650_s12 = smov 0  }
   0x3 LB: > { %s665_s13 = sadd.s32 4294967295, %s625_s12   ;;  %s468_s14 = sadd.s32 4294967294, %s625_s12   ;;  %s625_s12 = sphi %s650_s12, %s764_s12   ;;  %s621_s11 = sphi %s648_s11, %s763_s11   ;;  %s617_s10 = sphi %s646_s10, %s762_s10   ;;  %s613_s9 = sphi %s644_s9, %s761_s9  }
   0x4   : > { %s669_s15 = sadd.s32 1, %s625_s12   ;;  %s69_s16 = sadd.s32 1, %s621_s11 }
   0x5   : > { %s66_s17 = ssub.s32 %s625_s12, %s669_s15  ;;  %p79_p0 = scmp.ne.s32.totalorder %s621_s11, %s617_s10 }
   0x6   : > { %p67_p1 = scmp.eq.s32.totalorder %s66_s17, 0  ;;  %p80_p2 = scmp.eq.s32.totalorder %s665_s13, 1 }
   0x7   : > { %p85_p3 = scmp.ne.s32.totalorder %s617_s10, %s613_s9  ;;  %p86_p4 = scmp.eq.s32.totalorder %s468_s14, 1 }
   0x8   : > { %s680_s18 = scalar_select %p67_p1, %s621_s11, %s69_s16  }
   0x9   : > { %p682_p5 = por %p80_p2, %p79_p0  ;;  %p686_p6 = por %p86_p4, %p85_p3 }
   0xa   : > { %p471_p7 = scmp.ge.s32.totalorder %s625_s12, 1  ;;  %p114_p8 = scmp.lt.s32.totalorder %s625_s12, 3 }
   0xc   : > { %p115_p9 = pnand %p471_p7, %p114_p8 }
   0xd   : > { %p135_p10 = scmp.lt.s32.totalorder (!%p115_p9), %s665_s13, 1  ;;  %s132_s30 = sand.u32 (!%p115_p9), 1, %s617_s10  }
   0xe   : > { %118 = sbr.rel (%p115_p9) target bundleno = 401 (0x191), region = 28  ;;  %s711_s3 = sshll.u32 (!%p115_p9), %s132_s30, 1 }
   0xf   : > { %s509_s4 = sshll.u32 (!%p115_p9), %s665_s13, 1  ;;  %s134_s8 = scalar_lea.vmem (!%p115_p9), [#allocation2], %s711_s3 }
  0x10   : > { %s404_s7 = scalar_lea.hbm (!%p115_p9), %s756_s2, %s509_s4  ;;  %s394_s16 = scalar_lea.sflag (!%p115_p9), [#allocation3], %s132_s30 }
  0x11   : > { %s408_s14 = sshll.u32 (!%p115_p9), %s404_s7, 4  ;;  %s583_s24 = scalar_lea.hbm (!%p115_p9), %s756_s2, 4  ;;  %s409_s14 = int_to_ptr.hbm [resolvable:$true] %s408_s14 }
  0x12   : > { %s577_s17 = sshra.s32 (!%p115_p9), %s409_s14, 4  ;;  %s578_s17 = int_to_ptr.hbm [resolvable:$true] %s577_s17 }
  0x13   : > { %v512_v0 = vld [vmem:[%s755_s1] sm:$0xff]  ;;  %v141_v1 = vlaneseq  ;;  %v195_v2 = vld [vmem:[%s755_s1 + $0x8] sm:$0xf]  ;;  %s136_s25 = scalar_select %p135_p10, %s665_s13, 1  ;;  %vm229_vm0 = vcmask 1043456   ;;  %v627_v13 = vmov 0.0  }
  0x14   : > { %206 = vxpose.xlu0.c.b16.start [1/2] (short) (narrow) %v512_v0, 32  ;;  %v201_v4 = vunpack.c.l.b16 %v195_v2  ;;  %v628_v26 = vmov 1.0|1.0   ;;  %s406_s13 = sshll.u32 %s134_s8, 4  ;;  %s579_s21 = scalar_lea.hbm %s578_s17, 2  ;;  %s407_s13 = int_to_ptr.vmem [resolvable:$true] %s406_s13 }
  0x15   : > { %v142_v3 = vshrl.u32 %v141_v1, 7  ;;  %s473_s26 = sshll.u32 %s136_s25, 2  ;;  %p580_p11 = scmp.ne.s32.totalorder %s578_s17, %s579_s21 }
  0x16   : > { %s138_s29 = scalar_lea.vmem %s754_s0, %s473_s26  ;;  %v203_v11 = vpack.c.b16 %v201_v4, %v201_v4  ;;  %p584_p0 = scmp.lt.s32.totalorder %s578_s17, %s756_s2 }
  0x17   : > { %v144_v5 = vadd.s32 16, %v142_v3  ;;  %v140_v6 = vld [vmem:[%s138_s29] sm:$0xf]  ;;  %v143_v12 = vadd.s32 8, %v142_v3  ;;  %p581_p12 = pnand %p580_p11, %p682_p5  ;;  %p585_p1 = scmp.lt.s32.totalorder %s583_s24, %s579_s21 }
  0x18   : > { %v145_v7 = vperm.slane %v140_v6, 0  ;;  %v146_v8 = vperm.slane %v140_v6, 1  ;;  %v147_v9 = vperm.slane %v140_v6, 2  ;;  %v148_v10 = vperm.slane %v140_v6, 3 }
  0x19   : > { %p582_p13 = pneg %p581_p12  ;;  %p586_p2 = por %p585_p1, %p584_p0 }
  0x1a   : > { %vm157_vm1 = vcmp.eq.s32.totalorder %v144_v5, %v145_v7  ;;  %vm158_vm2 = vcmp.eq.s32.totalorder %v144_v5, %v146_v8  ;;  %vm159_vm3 = vcmp.eq.s32.totalorder %v144_v5, %v147_v9  ;;  %vm160_vm4 = vcmp.eq.s32.totalorder %v144_v5, %v148_v10 }
  0x1b   : > { %v482_v14 = vsel %vm157_vm1, 1.0, %v627_v13  ;;  %v483_v15 = vsel %vm158_vm2, 1.0, %v627_v13  ;;  %v484_v16 = vsel %vm159_vm3, 1.0, %v627_v13  ;;  %v485_v17 = vsel %vm160_vm4, 1.0, %v627_v13  ;;  %p587_p3 = pnand %p586_p2, %p582_p13 }
  0x1c   : > { %v189_v18 = vpack.c.bf16 %v482_v14, %v482_v14  ;;  %v190_v19 = vpack.c.bf16 %v483_v15, %v483_v15  ;;  %v191_v20 = vpack.c.bf16 %v484_v16, %v484_v16  ;;  %v192_v21 = vpack.c.bf16 %v485_v17, %v485_v17 }
  0x1d   : > { %vm149_vm5 = vcmp.eq.s32.totalorder %v142_v3, %v145_v7  ;;  %vm153_vm6 = vcmp.eq.s32.totalorder %v143_v12, %v145_v7  ;;  %vm150_vm7 = vcmp.eq.s32.totalorder %v142_v3, %v146_v8  ;;  %vm154_vm8 = vcmp.eq.s32.totalorder %v143_v12, %v146_v8 }
  0x1e   : > { %v231_v22 = vsel %vm229_vm0, %v189_v18, 0  ;;  %v234_v23 = vsel %vm229_vm0, %v190_v19, 0  ;;  %v237_v24 = vsel %vm229_vm0, %v191_v20, 0  ;;  %v240_v25 = vsel %vm229_vm0, %v192_v21, 0  ;;  %vm490_vm9 = vmpackc.low %vm153_vm6, %vm149_vm5 }
  0x1f   : > { %248 = vmatpush.bf16.msra.mxu0 %v231_v22  ;;  %267 = vmatpush.bf16.msra.mxu1 %v234_v23  ;;  %vm151_vm10 = vcmp.eq.s32.totalorder %v142_v3, %v147_v9  ;;  %vm155_vm11 = vcmp.eq.s32.totalorder %v143_v12, %v147_v9  ;;  %vm152_vm12 = vcmp.eq.s32.totalorder %v142_v3, %v148_v10  ;;  %vm494_vm13 = vmpackc.low %vm154_vm8, %vm150_vm7  ;;  %vm222_vm2 = vcmask 195584  }
  0x20   : > { %286 = vmatpush.bf16.msra.mxu2 %v237_v24  ;;  %305 = vmatpush.bf16.msra.mxu3 %v240_v25  ;;  %vm156_vm14 = vcmp.eq.s32.totalorder %v143_v12, %v148_v10  ;;  %vm498_vm15 = vmpackc.low %vm155_vm11, %vm151_vm10  ;;  %vm390_vm11 = vcmp.lt.s32.totalorder %v141_v1, 256 }
  0x21   : > { %vm502_vm1 = vmpackc.low %vm156_vm14, %vm152_vm12 }
  0x23   : > { %491 = vmatpush.bf16.msk.msra.mxu0 %vm490_vm9, %v628_v26  ;;  %495 = vmatpush.bf16.msk.msra.mxu1 %vm494_vm13, %v628_v26  ;;  %vm385_vm9 = vcmask 1040384  }
  0x24   : > { %207 = vxpose.xlu0.c.b16.end [2/2] (short) (narrow) %v203_v11, 32  ;;  %499 = vmatpush.bf16.msk.msra.mxu2 %vm498_vm15, %v628_v26 }
  0x25   : > { %503 = vmatpush.bf16.msk.msra.mxu3 %vm502_vm1, %v628_v26 }
  0xc0   : > { %v214_v27 = vpop.trf.xlu0 }
  0xc1   : > { %492 = vmatmul.msk.bf16.vlgmr.msra.gmra.mxu0 %vm222_vm2, %v214_v27  ;;  %496 = vmatmul.msk.bf16.vlgmr.msra.gmra.mxu1 %vm222_vm2, %v214_v27 }
  0xc2   : > { %500 = vmatmul.msk.bf16.vlgmr.msra.gmra.mxu2 %vm222_vm2, %v214_v27  ;;  %504 = vmatmul.msk.bf16.vlgmr.msra.gmra.mxu3 %vm222_vm2, %v214_v27 }
  0xd0   : > { %v215_v28 = vpop.trf.xlu0 }
  0xd1   : > { %493 = vmatmul.msk.bf16.gmra.mxu0 %vm222_vm2, %v215_v28  ;;  %497 = vmatmul.msk.bf16.gmra.mxu1 %vm222_vm2, %v215_v28 }
  0xd2   : > { %501 = vmatmul.msk.bf16.gmra.mxu2 %vm222_vm2, %v215_v28  ;;  %505 = vmatmul.msk.bf16.gmra.mxu3 %vm222_vm2, %v215_v28 }
 0x13e   : > { %v251_v29 = vpop.f32.mrf.mxu0  ;;  %v270_v30 = vpop.f32.mrf.mxu1 }
 0x145   : > { %v289_v31 = vpop.f32.mrf.mxu2  ;;  %v308_v32 = vpop.f32.mrf.mxu3 }
 0x146   : > { %v253_v33 = vpop.f32.mrf.mxu0  ;;  %v272_v34 = vpop.f32.mrf.mxu1  ;;  %v318_v43 = vmul.f32 %v289_v31, %v251_v29  ;;  %v319_v44 = vmul.f32 %v308_v32, %v270_v30 }
 0x14d   : > { %v291_v35 = vpop.f32.mrf.mxu2  ;;  %v310_v36 = vpop.f32.mrf.mxu3 }
 0x14e   : > { %v256_v37 = vpop.f32.mrf.mxu0  ;;  %v275_v38 = vpop.f32.mrf.mxu1  ;;  %v320_v41 = vmul.f32 %v291_v35, %v253_v33  ;;  %v321_v42 = vmul.f32 %v310_v36, %v272_v34 }
 0x150   : > { %v326_v47 = vadd.f32 %v320_v41, %v318_v43  ;;  %v335_v48 = vadd.f32 %v321_v42, %v319_v44 }
 0x155   : > { %v294_v39 = vpop.f32.mrf.mxu2  ;;  %v313_v40 = vpop.f32.mrf.mxu3 }
 0x156   : > { %v322_v45 = vmul.f32 %v294_v39, %v256_v37  ;;  %v323_v46 = vmul.f32 %v313_v40, %v275_v38  ;;  %v258_v49 = vpop.f32.mrf.mxu0  ;;  %v277_v50 = vpop.f32.mrf.mxu1 }
 0x158   : > { %v327_v53 = vadd.f32 %v326_v47, %v322_v45  ;;  %v336_v54 = vadd.f32 %v335_v48, %v323_v46 }
 0x15d   : > { %v296_v51 = vpop.f32.mrf.mxu2  ;;  %v315_v52 = vpop.f32.mrf.mxu3 }
 0x15e   : > { %v324_v55 = vmul.f32 %v296_v51, %v258_v49  ;;  %v325_v56 = vmul.f32 %v315_v52, %v277_v50 }
 0x160   : > { %v328_v57 = vadd.f32 %v327_v53, %v324_v55  ;;  %v337_v58 = vadd.f32 %v336_v54, %v325_v56 }
 0x162   : > { %v329_v59 = vrot.slane %v328_v57, 4  ;;  %v338_v60 = vrot.slane %v337_v58, 4 }
 0x164   : > { %v330_v61 = vadd.f32 %v329_v59, %v328_v57  ;;  %v339_v62 = vadd.f32 %v338_v60, %v337_v58 }
 0x166   : > { %v331_v63 = vrot.slane %v330_v61, 2  ;;  %v340_v0 = vrot.slane %v339_v62, 2 }
 0x168   : > { %v332_v2 = vadd.f32 %v331_v63, %v330_v61  ;;  %v341_v3 = vadd.f32 %v340_v0, %v339_v62 }
 0x16a   : > { %v333_v4 = vrot.slane %v332_v2, 1  ;;  %v342_v5 = vrot.slane %v341_v3, 1 }
 0x16c   : > { %v334_v6 = vadd.f32 %v333_v4, %v332_v2  ;;  %v343_v7 = vadd.f32 %v342_v5, %v341_v3 }
 0x16e   : > { %v506_v8 = vmul.f32 -1.442695, %v334_v6  ;;  %v507_v9 = vmul.f32 -1.442695, %v343_v7 }
 0x170   : > { %555 = vpow2.f32 %v506_v8 }
 0x171   : > { %557 = vpow2.f32 %v507_v9 }
 0x176   : > { %v556_v10 = vpop.eup %555 }
 0x177   : > { %v558_v11 = vpop.eup %557  ;;  %v350_v12 = vadd.f32 1.0, %v556_v10 }
 0x178   : > { %v351_v13 = vadd.f32 1.0, %v558_v11 }
 0x179   : > { %559 = vrcp.f32 %v350_v12  ;;  %vm357_vm4 = vweird.f32 %v350_v12  ;;  %v363_v25 = vand.u32 2147483648, %v350_v12  ;;  %v361_v27 = vand.u32 2147483647, %v350_v12 }
 0x17a   : > { %561 = vrcp.f32 %v351_v13  ;;  %v378_v21 = vand.u32 2147483648, %v351_v13  ;;  %v376_v23 = vand.u32 2147483647, %v351_v13  ;;  %vm372_vm6 = vweird.f32 %v351_v13 }
 0x17b   : > { %v364_v32 = vor.u32 1.1754944e-38, %v363_v25  ;;  %vm362_vm10 = vcmp.eq.f32.partialorder %v361_v27, 8.507059e+37 }
 0x17c   : > { %v379_v29 = vor.u32 1.1754944e-38, %v378_v21  ;;  %vm377_vm8 = vcmp.eq.f32.partialorder %v376_v23, 8.507059e+37 }
 0x17f   : > { %v560_v14 = vpop.eup %559 }
 0x180   : > { %v562_v15 = vpop.eup %561  ;;  %v353_v16 = vmul.f32 %v560_v14, %v350_v12  ;;  %vm358_vm0 = vweird.f32 %v560_v14 }
 0x181   : > { %v368_v17 = vmul.f32 %v562_v15, %v351_v13  ;;  %vm373_vm3 = vweird.f32 %v562_v15  ;;  %vm717_vm5 = vmor %vm357_vm4, %vm358_vm0 }
 0x182   : > { %v354_v18 = vsub.f32 1.0, %v353_v16  ;;  %vm374_vm7 = vmor %vm372_vm6, %vm373_vm3 }
 0x183   : > { %v369_v19 = vsub.f32 1.0, %v368_v17 }
 0x184   : > { %v355_v20 = vmul.f32 %v560_v14, %v354_v18 }
 0x185   : > { %v370_v22 = vmul.f32 %v562_v15, %v369_v19 }
 0x186   : > { %v356_v24 = vadd.f32 %v560_v14, %v355_v20 }
 0x187   : > { %v371_v28 = vadd.f32 %v562_v15, %v370_v22 }
 0x188   : > { %v360_v30 = vsel %vm717_vm5, %v560_v14, %v356_v24 }
 0x189   : > { %v375_v31 = vsel %vm374_vm7, %v562_v15, %v371_v28  ;;  %v365_v35 = vsel %vm362_vm10, %v364_v32, %v360_v30 }
 0x18a   : > { %v380_v33 = vsel %vm377_vm8, %v379_v29, %v375_v31 }
 0x18b   : > { %v384_v34 = vrot.slane %v380_v33, 7 }
 0x18d   : > { %v386_v36 = vsel %vm385_vm9, %v365_v35, %v384_v34 }
 0x18e   : > { %392 = vst.msk [vmem:[%s134_s8] sm:$0x3] %vm390_vm11, %v386_v36 }
 0x18f   : > { %590 = shalt.err (!%p587_p3)
}
 0x190   : > { %513 = dma.vmem_to_hbm [thread:$0]  (%p682_p5), %s407_s13, 32, %s409_s14, %s394_s16  }
 0x191 PF: > { %p519_p4 = scmp.ge.s32.totalorder %s625_s12, 2  ;;  %s420_s27 = sand.u32 1, %s613_s9  }
 0x192   : > { %s421_s28 = scalar_lea.sflag [#allocation3], %s420_s27 }
 0x193   : > { %p516_p7 = pnand %p519_p4, %p686_p6 }
 0x195   : > { %p517_p8 = pneg %p516_p7 }
 0x197   : > { %608 = dma.done.wait (%p517_p8), %s421_s28, 32  }
 0x198   : > { %610 = vsyncadd (%p517_p8), %s421_s28, 4294967264  ;;  %p12_p9 = scmp.ge.s32.totalorder %s669_s15, 4   ;;  %s761_s9 = smov %s617_s10 }
 0x199   : > { %s762_s10 = smov %s621_s11  ;;  %s763_s11 = smov %s680_s18 }
 0x19a   : > { %s764_s12 = smov %s669_s15  ;;  %14 = sbr.rel (!%p12_p9) target bundleno = 3 (0x3), region = 63 }
 0x19f   :  { %427 = vsyncpa [#allocation3], 1 }
 0x1a0   :  { %429 = vsyncpa [#allocation3 + $0x1], 1 }

</bundles_post_ra>
